<compile_context>
chip_gen: v7x
topology: tpu7x:2x2x1
jax: 0.10.0
libtpu: 0.0.40
codegen_flags: <defaults>
</compile_context>

<pallas_src>
import functools

import jax
import jax.numpy as jnp
from jax.experimental import pallas as pl
from jax.experimental.pallas import tpu as pltpu


def _sampler_kernel(logits_ref, gumbel_ref, temps_ref, out_ref, m_sc, i_sc,
                    *, tv: int, v_total: int):
    # logits_ref: (TB, TV) any float dtype      gumbel_ref: (TB, TV) f32
    # temps_ref:  (TB, 1)  f32                  out_ref:    (TB, 1)  i32
    # m_sc/i_sc:  (TB, 1)  f32 / i32 running argmax state (vocab-resident)
    j = pl.program_id(1)

    @pl.when(j == 0)
    def _():
        m_sc[...] = jnp.full_like(m_sc[...], -jnp.inf)
        i_sc[...] = jnp.zeros_like(i_sc[...])

    x = logits_ref[...].astype(jnp.float32)            # (TB, TV)
    noise = gumbel_ref[...].astype(jnp.float32)        # (TB, TV)
    t = temps_ref[...].astype(jnp.float32)             # (TB, 1)

    greedy_row = t == 0.0
    t_safe = jnp.where(greedy_row, 1.0, t)
    inv_t = 1.0 / t_safe                               # (TB, 1) only -- cheap
    scale = jnp.where(greedy_row, 0.0, 1.0)            # zero noise on greedy rows

    # Gumbel-max score: argmax(g) == sampled token; == greedy argmax when t == 0.
    g = x * inv_t + noise * scale                      # (TB, TV)

    col = jax.lax.broadcasted_iota(jnp.int32, g.shape, 1) + j * tv
    if v_total % tv != 0:                              # static: mask padded lanes
        g = jnp.where(col < v_total, g, -jnp.inf)

    # Local argmax of this vocab tile (first-max index, like torch.argmax).
    local_max = jnp.max(g, axis=-1, keepdims=True)                       # (TB, 1)
    big = jnp.int32(jnp.iinfo(jnp.int32).max)
    local_idx = jnp.min(jnp.where(g == local_max, col, big),
                        axis=-1, keepdims=True)                          # (TB, 1)

    # Online update; strict ">" keeps the earliest-index tie-break across tiles.
    better = local_max > m_sc[...]
    i_sc[...] = jnp.where(better, local_idx, i_sc[...])
    m_sc[...] = jnp.where(better, local_max, m_sc[...])

    @pl.when(j == pl.num_programs(1) - 1)
    def _():
        out_ref[...] = i_sc[...]


def sampler(logits: jax.Array, temperatures: jax.Array, seed: int = 0,
            *, tb: int | None = None, tv: int | None = None) -> jax.Array:
    """logits: [B, V] (any float dtype), temperatures: [B] float. Returns [B] int32."""
    B, V = logits.shape
    temps2 = temperatures.reshape(B, 1).astype(jnp.float32)

    # Gumbel(0, 1) noise == -log(Exp(1)); generated host-side (see TODO above).
    gumbel = jax.random.gumbel(jax.random.PRNGKey(seed), (B, V), dtype=jnp.float32)

    # Tile sizes: either equal to the full dim or (8, 128)-aligned.
    if tb is None:
        tb = B if B <= 256 else 256
    if tv is None:
        tv = V if V <= 2048 else 2048

    grid = (pl.cdiv(B, tb), pl.cdiv(V, tv))
    kernel = functools.partial(_sampler_kernel, tv=tv, v_total=V)

    out = pl.pallas_call(
        kernel,
        out_shape=jax.ShapeDtypeStruct((B, 1), jnp.int32),
        grid_spec=pltpu.PrefetchScalarGridSpec(
            num_scalar_prefetch=0,
            grid=grid,
            in_specs=[
                pl.BlockSpec((tb, tv), lambda i, j: (i, j)),   # logits
                pl.BlockSpec((tb, tv), lambda i, j: (i, j)),   # gumbel noise
                pl.BlockSpec((tb, 1), lambda i, j: (i, 0)),    # temperatures
            ],
            out_specs=pl.BlockSpec((tb, 1), lambda i, j: (i, 0)),
            scratch_shapes=[
                pltpu.VMEM((tb, 1), jnp.float32),   # running max
                pltpu.VMEM((tb, 1), jnp.int32),     # running argmax index
            ],
        ),
        compiler_params=pltpu.CompilerParams(
            dimension_semantics=("parallel", "arbitrary"),
        ),
    )(logits, gumbel, temps2)
    return out[:, 0]


if __name__ == "__main__":
    key = jax.random.PRNGKey(0)
    B, V = 8, 2048
    k_logits, _ = jax.random.split(key)
    # bf16 logits from "HBM"; the kernel upcasts to f32 in-register.
    logits = (jax.random.normal(k_logits, (B, V), dtype=jnp.float32) * 3.0).astype(jnp.bfloat16)
    # mix of greedy (temp==0) and sampling rows
    temperatures = jnp.array([0.0, 1.0, 0.5, 0.0, 2.0, 1.0, 0.7, 0.0], dtype=jnp.float32)

    # tv=512 exercises the multi-tile online-argmax path (4 vocab tiles).
    tokens = sampler(logits, temperatures, seed=1234, tv=512)
    tokens = jax.block_until_ready(tokens)

    # sanity: rows with temperature 0 must match plain argmax
    ref_greedy = jnp.argmax(logits.astype(jnp.float32), axis=-1).astype(jnp.int32)
    greedy_rows = temperatures == 0.0
    assert bool(jnp.all(jnp.where(greedy_rows, tokens == ref_greedy, True)))
    assert tokens.shape == (B,) and tokens.dtype == jnp.int32
    assert bool(jnp.all((tokens >= 0) & (tokens < V)))

    print("KERNEL_OK")
</pallas_src>

<mosaic_0001>
module attributes {stable_mosaic.version = 11 : i64} {
  func.func @_sampler_kernel(%arg0: i32, %arg1: i32, %arg2: memref<8x512xbf16, #tpu.memory_space<vmem>>, %arg3: memref<8x512xf32, #tpu.memory_space<vmem>>, %arg4: memref<8x1xf32, #tpu.memory_space<vmem>>, %arg5: memref<8x1xi32, #tpu.memory_space<vmem>>, %arg6: memref<8x1xf32, #tpu.memory_space<vmem>>, %arg7: memref<8x1xi32, #tpu.memory_space<vmem>>) attributes {dimension_semantics = [#tpu.dimension_semantics<parallel>, #tpu.dimension_semantics<arbitrary>], iteration_bounds = array<i64: 1, 4>, scalar_prefetch = 0 : i64, scratch_operands = 2 : i64, tpu.core_type = #tpu.core_type<tc>, window_params = [{transform_indices = @transform_0, window_bounds = array<i64: 8, 512>}, {transform_indices = @transform_1, window_bounds = array<i64: 8, 512>}, {transform_indices = @transform_2, window_bounds = array<i64: 8, 1>}, {transform_indices = @transform_3, window_bounds = array<i64: 8, 1>}]} {
    %c0_i32 = arith.constant 0 : i32
    %0 = arith.cmpi eq, %arg1, %c0_i32 : i32
    %1 = arith.extui %0 : i1 to i32
    %c0_i32_0 = arith.constant 0 : i32
    %2 = arith.cmpi ne, %1, %c0_i32_0 : i32
    scf.if %2 {
      %cst_23 = arith.constant 0xFF800000 : f32
      %44 = vector.broadcast %cst_23 : f32 to vector<8x1xf32>
      %c0_24 = arith.constant 0 : index
      %c0_25 = arith.constant 0 : index
      %45 = vector.load %arg6[%c0_24, %c0_25] : memref<8x1xf32, #tpu.memory_space<vmem>>, vector<8x1xf32>
      tpu.vector_store %arg6[%c0_24, %c0_25], %44 {strides = array<i32>} : memref<8x1xf32, #tpu.memory_space<vmem>>, vector<8x1xf32>,
      %c0_i32_26 = arith.constant 0 : i32
      %46 = vector.broadcast %c0_i32_26 : i32 to vector<8x1xi32>
      %c0_27 = arith.constant 0 : index
      %c0_28 = arith.constant 0 : index
      %47 = vector.load %arg7[%c0_27, %c0_28] : memref<8x1xi32, #tpu.memory_space<vmem>>, vector<8x1xi32>
      tpu.vector_store %arg7[%c0_27, %c0_28], %46 {strides = array<i32>} : memref<8x1xi32, #tpu.memory_space<vmem>>, vector<8x1xi32>,
    } else {
    }
    %c0 = arith.constant 0 : index
    %c0_1 = arith.constant 0 : index
    %3 = vector.load %arg2[%c0, %c0_1] : memref<8x512xbf16, #tpu.memory_space<vmem>>, vector<8x512xbf16>
    %4 = arith.extf %3 : vector<8x512xbf16> to vector<8x512xf32>
    %c0_2 = arith.constant 0 : index
    %c0_3 = arith.constant 0 : index
    %5 = vector.load %arg3[%c0_2, %c0_3] : memref<8x512xf32, #tpu.memory_space<vmem>>, vector<8x512xf32>
    %c0_4 = arith.constant 0 : index
    %c0_5 = arith.constant 0 : index
    %6 = vector.load %arg4[%c0_4, %c0_5] : memref<8x1xf32, #tpu.memory_space<vmem>>, vector<8x1xf32>
    %cst = arith.constant 0.000000e+00 : f32
    %7 = vector.broadcast %cst : f32 to vector<8x1xf32>
    %8 = arith.cmpf oeq, %6, %7 : vector<8x1xf32>
    %cst_6 = arith.constant 1.000000e+00 : f32
    %9 = vector.broadcast %cst_6 : f32 to vector<8x1xf32>
    %10 = arith.select %8, %9, %6 : vector<8x1xi1>, vector<8x1xf32>
    %cst_7 = arith.constant 1.000000e+00 : f32
    %11 = vector.broadcast %cst_7 : f32 to vector<8x1xf32>
    %12 = arith.divf %11, %10 : vector<8x1xf32>
    %cst_8 = arith.constant 0.000000e+00 : f32
    %cst_9 = arith.constant 1.000000e+00 : f32
    %13 = vector.broadcast %cst_8 : f32 to vector<8x1xf32>
    %14 = vector.broadcast %cst_9 : f32 to vector<8x1xf32>
    %15 = arith.select %8, %13, %14 : vector<8x1xi1>, vector<8x1xf32>
    %16 = vector.broadcast %12 : vector<8x1xf32> to vector<8x512xf32>
    %17 = arith.mulf %4, %16 : vector<8x512xf32>
    %18 = vector.broadcast %15 : vector<8x1xf32> to vector<8x512xf32>
    %19 = arith.mulf %5, %18 : vector<8x512xf32>
    %20 = arith.addf %17, %19 : vector<8x512xf32>
    %21 = tpu.iota {dimensions = array<i32: 1>} : vector<8x512xi32>
    %c512_i32 = arith.constant 512 : i32
    %22 = arith.muli %arg1, %c512_i32 : i32
    %23 = vector.broadcast %22 : i32 to vector<8x512xi32>
    %24 = arith.addi %21, %23 : vector<8x512xi32>
    %cst_10 = arith.constant dense<0xFF800000> : vector<8xf32>
    %25 = vector.multi_reduction <maximumf>, %20, %cst_10 [1] : vector<8x512xf32> to vector<8xf32>
    %26 = vector.shape_cast %25 : vector<8xf32> to vector<8x1xf32>
    %27 = vector.broadcast %26 : vector<8x1xf32> to vector<8x512xf32>
    %28 = arith.cmpf oeq, %20, %27 : vector<8x512xf32>
    %c2147483647_i32 = arith.constant 2147483647 : i32
    %29 = vector.broadcast %c2147483647_i32 : i32 to vector<8x512xi32>
    %30 = arith.select %28, %24, %29 : vector<8x512xi1>, vector<8x512xi32>
    %cst_11 = arith.constant dense<2147483647> : vector<8xi32>
    %31 = vector.multi_reduction <minsi>, %30, %cst_11 [1] : vector<8x512xi32> to vector<8xi32>
    %32 = vector.shape_cast %31 : vector<8xi32> to vector<8x1xi32>
    %c0_12 = arith.constant 0 : index
    %c0_13 = arith.constant 0 : index
    %33 = vector.load %arg6[%c0_12, %c0_13] : memref<8x1xf32, #tpu.memory_space<vmem>>, vector<8x1xf32>
    %34 = arith.cmpf ogt, %26, %33 : vector<8x1xf32>
    %c0_14 = arith.constant 0 : index
    %c0_15 = arith.constant 0 : index
    %35 = vector.load %arg7[%c0_14, %c0_15] : memref<8x1xi32, #tpu.memory_space<vmem>>, vector<8x1xi32>
    %36 = arith.select %34, %32, %35 : vector<8x1xi1>, vector<8x1xi32>
    %c0_16 = arith.constant 0 : index
    %c0_17 = arith.constant 0 : index
    %37 = vector.load %arg7[%c0_16, %c0_17] : memref<8x1xi32, #tpu.memory_space<vmem>>, vector<8x1xi32>
    tpu.vector_store %arg7[%c0_16, %c0_17], %36 {strides = array<i32>} : memref<8x1xi32, #tpu.memory_space<vmem>>, vector<8x1xi32>,
    %c0_18 = arith.constant 0 : index
    %c0_19 = arith.constant 0 : index
    %38 = vector.load %arg6[%c0_18, %c0_19] : memref<8x1xf32, #tpu.memory_space<vmem>>, vector<8x1xf32>
    %39 = arith.select %34, %26, %38 : vector<8x1xi1>, vector<8x1xf32>
    %c0_20 = arith.constant 0 : index
    %c0_21 = arith.constant 0 : index
    %40 = vector.load %arg6[%c0_20, %c0_21] : memref<8x1xf32, #tpu.memory_space<vmem>>, vector<8x1xf32>
    tpu.vector_store %arg6[%c0_20, %c0_21], %39 {strides = array<i32>} : memref<8x1xf32, #tpu.memory_space<vmem>>, vector<8x1xf32>,
    %c3_i32 = arith.constant 3 : i32
    %41 = arith.cmpi eq, %arg1, %c3_i32 : i32
    %42 = arith.extui %41 : i1 to i32
    %c0_i32_22 = arith.constant 0 : i32
    %43 = arith.cmpi ne, %42, %c0_i32_22 : i32
    scf.if %43 {
      %c0_23 = arith.constant 0 : index
      %c0_24 = arith.constant 0 : index
      %44 = vector.load %arg7[%c0_23, %c0_24] : memref<8x1xi32, #tpu.memory_space<vmem>>, vector<8x1xi32>
      %c0_25 = arith.constant 0 : index
      %c0_26 = arith.constant 0 : index
      %45 = vector.load %arg5[%c0_25, %c0_26] : memref<8x1xi32, #tpu.memory_space<vmem>>, vector<8x1xi32>
      tpu.vector_store %arg5[%c0_25, %c0_26], %44 {strides = array<i32>} : memref<8x1xi32, #tpu.memory_space<vmem>>, vector<8x1xi32>,
    } else {
    }
    return
  }
  func.func @transform_0(%arg0: i32, %arg1: i32) -> (i32, i32) {
    %c0_i32 = arith.constant 0 : i32
    return %arg0, %arg1 : i32, i32
  }
  func.func @transform_1(%arg0: i32, %arg1: i32) -> (i32, i32) {
    %c0_i32 = arith.constant 0 : i32
    return %arg0, %arg1 : i32, i32
  }
  func.func @transform_2(%arg0: i32, %arg1: i32) -> (i32, i32) {
    %c0_i32 = arith.constant 0 : i32
    %c0_i32_0 = arith.constant 0 : i32
    return %arg0, %c0_i32 : i32, i32
  }
  func.func @transform_3(%arg0: i32, %arg1: i32) -> (i32, i32) {
    %c0_i32 = arith.constant 0 : i32
    %c0_i32_0 = arith.constant 0 : i32
    return %arg0, %c0_i32 : i32, i32
  }
}

</mosaic_0001>

<bundles_post_ra>
// kernel: tpu_custom_call.1
= control target key start
LH: loop header
LB: loop body
LE: loop exit
PB: predicated region body
PF: predicated region fallthrough
CT: control target
= control target key end

     0   :  { %8 = vsyncpa [#allocation5], 0  ;;  %s893_s0 = inlined_call_operand.hbm [shape: bf16[8,2048], index: 0, kind: input, shape index: {}]   ;;  %s894_s1 = inlined_call_operand.hbm [shape: f32[8,2048], index: 1, kind: input, shape index: {}]   ;;  %s895_s2 = inlined_call_operand.vmem [shape: f32[8,1], index: 2, kind: input, shape index: {}]   ;;  %s896_s3 = inlined_call_operand.vmem [shape: s32[8,1], index: 3, kind: output, shape index: {}]  }
   0x1   :  { %10 = vsyncpa [#allocation5 + $0x1], 0 }
   0x2   :  { %11 = vsyncpa [#allocation7], 0 }
   0x3   :  { %13 = vsyncpa [#allocation7 + $0x1], 0  ;;  %s712_s12 = smov 0   ;;  %s714_s13 = smov 0  }
   0x4   :  { %s716_s14 = smov 0   ;;  %s718_s15 = smov 0  }
   0x5   :  { %s720_s16 = smov 0   ;;  %s722_s17 = smov 0  }
   0x6 LB: > { %s482_s18 = sadd.s32 4294967295, %s684_s17   ;;  %s28_s19 = sadd.s32 1, %s680_s16  ;;  %s684_s17 = sphi %s722_s17, %s19_s17   ;;  %s680_s16 = sphi %s720_s16, %s910_s16   ;;  %s676_s15 = sphi %s718_s15, %s909_s15   ;;  %s672_s14 = sphi %s716_s14, %s908_s14   ;;  %s668_s13 = sphi %s714_s13, %s907_s13   ;;  %s664_s12 = sphi %s712_s12, %s906_s12  }
   0x7   : > { %p29_p0 = scmp.ge.s32.totalorder %s28_s19, 4  ;;  %s40_s20 = sadd.s32 1, %s672_s14 }
   0x8   : > { %p47_p1 = scmp.ne.s32.totalorder %s672_s14, %s668_s13  ;;  %p48_p2 = scmp.eq.s32.totalorder %s684_s17, 0 }
   0x9   : > { %s912_s19 = smov (%p29_p0, %s28_s19), 0  ;;  %p53_p4 = scmp.ne.s32.totalorder %s668_s13, %s664_s12 }
   0xa   : > { %p748_p3 = por %p48_p2, %p47_p1  ;;  %s36_s22 = ssub.s32 %s680_s16, %s912_s19 }
   0xb   : > { %p54_p5 = scmp.eq.s32.totalorder %s482_s18, 0  ;;  %p38_p6 = scmp.eq.s32.totalorder %s36_s22, 0 }
   0xc   : > { %p514_p8 = scmp.lt.s32.totalorder %s684_s17, 4  ;;  %s764_s25 = sand.u32 1, %s672_s14  }
   0xd   : > { %p755_p7 = por %p54_p5, %p53_p4  ;;  %s501_s26 = sshll.u32 %s680_s16, 8 }
   0xe   : > { %s761_s24 = scalar_select %p38_p6, %s672_s14, %s40_s20  }
   0xf   : > { %s899_s23 = scalar_select %p755_p7, 1, 0 }
  0x10   : > { %s486_s27 = sshll.u32 %s764_s25, 4  ;;  %s771_s30 = scalar_lea.hbm %s893_s0, %s501_s26 }
  0x11   : > { %s168_s4 = scalar_lea.vmem [#allocation4], %s486_s27  ;;  %p775_p9 = pnand %p514_p8, %p748_p3 }
  0x12   : > { %s178_s5 = sshll.u32 %s168_s4, 4  ;;  %s165_s7 = scalar_lea.sflag [#allocation5], %s764_s25  ;;  %s779_s5 = int_to_ptr.vmem [resolvable:$true] %s178_s5 }
  0x13   : > { %s570_s8 = scalar_lea.hbm %s771_s30, 256  ;;  %p572_p13 = pneg %p775_p9 }
  0x14   : > { %p571_p12 = scmp.ne.s32.totalorder %s771_s30, %s570_s8  ;;  %s575_s11 = scalar_lea.hbm %s893_s0, 1024 }
  0x15   : > { %p576_p2 = scmp.lt.u32.totalorder %s771_s30, %s893_s0  ;;  %p577_p3 = scmp.lt.u32.totalorder %s575_s11, %s570_s8 }
  0x16   : > { %p573_p0 = pnand %p572_p13, %p571_p12  ;;  %p579_p5 = scmp.lt.u32.totalorder %s570_s8, %s771_s30 }
  0x17   : > { %p578_p4 = por %p577_p3, %p576_p2 }
  0x18   : > { %p574_p1 = pneg %p573_p0 }
  0x19   : > { %p580_p6 = por %p579_p5, %p578_p4 }
  0x1b   : > { %p581_p8 = pnand %p580_p6, %p574_p1 }
  0x1d   : > { %584 = shalt.err (!%p581_p8)
}
  0x1e   : > { %s585_s20 = scalar_lea.vmem %s779_s5, 256  ;;  %s686_s21 = smov [#allocation4]  }
  0x1f   : > { %p586_p12 = scmp.ne.s32.totalorder %s779_s5, %s585_s20  ;;  %s590_s22 = sshll.u32 %s686_s21, 4  ;;  %s591_s22 = int_to_ptr.vmem [resolvable:$false] %s590_s22 }
  0x20   : > { %s592_s26 = scalar_lea.vmem %s591_s22, 512  ;;  %p593_p11 = scmp.lt.s32.totalorder %s779_s5, %s591_s22 }
  0x21   : > { %p588_p0 = pnand %p586_p12, %p572_p13  ;;  %p594_p2 = scmp.lt.s32.totalorder %s592_s26, %s585_s20 }
  0x23   : > { %p589_p10 = pneg %p588_p0  ;;  %p595_p3 = por %p594_p2, %p593_p11 }
  0x25   : > { %p596_p4 = pnand %p595_p3, %p589_p10 }
  0x27   : > { %599 = shalt.err (!%p596_p4)
}
  0x28   : > { %510 = dma.hbm_to_vmem [thread:$0]  (!%p775_p9), %s771_s30, 256, %s779_s5, %s165_s7  }
  0x29   : > { %p901_p1 = scmp.lt.s32.totalorder %s684_s17, 5  ;;  %p902_p5 = scmp.ge.s32.totalorder %s684_s17, 1 }
  0x2a   : > { %s489_s28 = sshll.u32 %s764_s25, 5  ;;  %s502_s29 = sshll.u32 %s680_s16, 9 }
  0x2b   : > { %p813_p6 = pnand %p902_p5, %p901_p1  ;;  %s822_s9 = scalar_lea.hbm %s894_s1, %s502_s29 }
  0x2c   : > { %s189_s10 = scalar_lea.vmem [#allocation6], %s489_s28  ;;  %s186_s30 = scalar_lea.sflag [#allocation7], %s764_s25 }
  0x2d   : > { %s903_s27 = scalar_select %p813_p6, 1, 0 }
  0x2e   : > { %s199_s11 = sshll.u32 %s189_s10, 4  ;;  %s600_s5 = scalar_lea.hbm %s822_s9, 512  ;;  %s200_s11 = int_to_ptr.vmem [resolvable:$true] %s199_s11 }
  0x2f   : > { %p601_p10 = scmp.ne.s32.totalorder %s822_s9, %s600_s5  ;;  %s605_s18 = scalar_lea.hbm %s894_s1, 2048 }
  0x30   : > { %p606_p12 = scmp.lt.u32.totalorder %s822_s9, %s894_s1  ;;  %p607_p0 = scmp.lt.u32.totalorder %s605_s18, %s600_s5 }
  0x31   : > { %p603_p11 = pnand %p601_p10, %p572_p13  ;;  %p609_p3 = scmp.lt.u32.totalorder %s600_s5, %s822_s9 }
  0x32   : > { %p608_p2 = por %p607_p0, %p606_p12 }
  0x33   : > { %p604_p8 = pneg %p603_p11 }
  0x34   : > { %p610_p4 = por %p609_p3, %p608_p2 }
  0x36   : > { %p611_p1 = pnand %p610_p4, %p604_p8 }
  0x38   : > { %614 = shalt.err (!%p611_p1)
}
  0x39   : > { %s615_s25 = scalar_lea.vmem %s200_s11, 512  ;;  %s687_s22 = smov [#allocation6]  }
  0x3a   : > { %p616_p5 = scmp.ne.s32.totalorder %s200_s11, %s615_s25  ;;  %s620_s26 = sshll.u32 %s687_s22, 4  ;;  %s621_s26 = int_to_ptr.vmem [resolvable:$false] %s620_s26 }
  0x3b   : > { %s622_s28 = scalar_lea.vmem %s621_s26, 1024  ;;  %p623_p7 = scmp.lt.s32.totalorder %s200_s11, %s621_s26 }
  0x3c   : > { %p618_p10 = pnand %p616_p5, %p572_p13  ;;  %p624_p6 = scmp.lt.s32.totalorder %s622_s28, %s615_s25 }
  0x3e   : > { %p619_p11 = pneg %p618_p10  ;;  %p625_p0 = por %p624_p6, %p623_p7 }
  0x40   : > { %p626_p12 = pnand %p625_p0, %p619_p11 }
  0x42   : > { %629 = shalt.err (!%p626_p12)
}
  0x43   : > { %513 = dma.hbm_to_vmem [thread:$0]  (!%p775_p9), %s822_s9, 512, %s200_s11, %s186_s30  }
  0x44   : > { %p904_p8 = scmp.ne.s32.totalorder %s903_s27, 0 }
  0x45   : > { %s210_s29 = sand.u32 (!%p904_p8), 1, %s668_s13   ;;  %p905_p13 = scmp.ne.s32.totalorder (!%p904_p8), %s899_s23, 0 }
  0x46   : > { %208 = sbr.rel (%p904_p8) target bundleno = 697 (0x2b9), region = 32  ;;  %s493_s4 = sshll.u32 (!%p904_p8), %s210_s29, 4 }
  0x47   : > { %s211_s8 = scalar_lea.sflag (!%p904_p8), [#allocation5], %s210_s29  ;;  %s214_s10 = scalar_lea.vmem (!%p904_p8), [#allocation4], %s493_s4 }
  0x4d   : > { %655 = dma.done.wait (%p905_p13), %s211_s8, 256  }
  0x4e   : > { %657 = vsyncadd (%p905_p13), %s211_s8, 4294967040  ;;  %s494_s5 = sshll.u32 %s210_s29, 5  ;;  %s220_s7 = scalar_lea.sflag [#allocation7], %s210_s29 }
  0x4f   : > { %s851_s6 = scalar_lea.vmem [#allocation6], %s494_s5 }
  0x50   : > { %659 = dma.done.wait (%p905_p13), %s220_s7, 512  }
  0x51   : > { %661 = vsyncadd (%p905_p13), %s220_s7, 4294966784  ;;  %p495_p7 = scmp.ne.s32.totalorder %s676_s15, 0 }
  0x52   : > { %vm268_vm0 = vcmask (!%p495_p7), 7168   ;;  %v688_v0 = vmov (!%p495_p7), -inf   ;;  %v689_v1 = vmov (!%p495_p7), 0  }
  0x53   : > { %267 = sbr.rel (%p495_p7) target bundleno = 90 (0x5a), region = 44  ;;  %269 = vst.msk [vmem:[#allocation2] sm:$0xff] (!%p495_p7), %vm268_vm0, %v688_v0  ;;  %270 = vst.msk [vmem:[#allocation3] sm:$0xff] (!%p495_p7), %vm268_vm0, %v689_v1 }
  0x5a PF: > { %v281_v2 = vld [vmem:[%s895_s2] sm:$0xff]  ;;  %v690_v3 = vmov 0   ;;  %v691_v6 = vmov 1.0   ;;  %v272_v9 = vld [vmem:[%s214_s10 + $0x8] sm:$0xff]  ;;  %v277_v15 = vld [vmem:[%s851_s6] sm:$0xff]  ;;  %v309_v35 = vlaneseq  ;;  %s496_s23 = sshll.u32 %s676_s15, 9 }
  0x5b   : > { %567 = vset.pattern.permute.xlu0 %v690_v3  ;;  %vm282_vm1 = vcmp.eq.f32.partialorder %v281_v2, 0.0  ;;  %v271_v8 = vld [vmem:[%s214_s10] sm:$0xff]  ;;  %v275_v13 = vunpack.c.l.bf16 %v272_v9  ;;  %v276_v14 = vunpack.c.h.bf16 %v272_v9  ;;  %v278_v16 = vld [vmem:[%s851_s6 + $0x8] sm:$0xff]  ;;  %v280_v18 = vld [vmem:[%s851_s6 + $0x18] sm:$0xff]  ;;  %v315_v40 = vstv %s496_s23  ;;  %p497_p9 = scmp.ne.s32.totalorder %s676_s15, 3 }
  0x5c   : > { %v283_v4 = vsel %vm282_vm1, 1.0, %v281_v2  ;;  %v286_v7 = vsel %vm282_vm1, 0.0, %v691_v6  ;;  %v273_v11 = vunpack.c.l.bf16 %v271_v8  ;;  %v274_v12 = vunpack.c.h.bf16 %v271_v8  ;;  %v279_v17 = vld [vmem:[%s851_s6 + $0x10] sm:$0xff]  ;;  %v355_v1 = vld [vmem:[#allocation3] sm:$0xff] }
  0x5d   : > { %568 = vrcp.f32 %v283_v4  ;;  %v310_v36 = vand.u32 127, %v309_v35  ;;  %v353_v45 = vld [vmem:[#allocation2] sm:$0xff]  ;;  %vm357_vm2 = vcmask 7168  }
  0x5f   : > { %v311_v37 = vadd.s32 128, %v310_v36  ;;  %v312_v38 = vadd.s32 256, %v310_v36  ;;  %v313_v39 = vadd.s32 384, %v310_v36  ;;  %v316_v41 = vadd.s32 %v315_v40, %v310_v36 }
  0x61   : > { %v317_v42 = vadd.s32 %v315_v40, %v311_v37  ;;  %v318_v43 = vadd.s32 %v315_v40, %v312_v38  ;;  %v319_v44 = vadd.s32 %v315_v40, %v313_v39 }
  0x67   : > { %v569_v5 = vpop.eup %568 }
  0x68   : > { %289 = vperm.xlu0 %567, %v569_v5  }
  0x6c   : > { %298 = vperm.xlu0 %567, %v286_v7  }
  0xe7   : > { %v290_v10 = vpop.permute.xlu0 %289 }
  0xe8   : > { %v292_v19 = vmul.f32 %v290_v10, %v273_v11  ;;  %v293_v20 = vmul.f32 %v290_v10, %v274_v12  ;;  %v294_v21 = vmul.f32 %v290_v10, %v275_v13  ;;  %v295_v22 = vmul.f32 %v290_v10, %v276_v14 }
  0xeb   : > { %v299_v23 = vpop.permute.xlu0 %298 }
  0xec   : > { %v301_v24 = vmul.f32 %v299_v23, %v277_v15  ;;  %v302_v25 = vmul.f32 %v299_v23, %v278_v16  ;;  %v303_v26 = vmul.f32 %v299_v23, %v279_v17  ;;  %v304_v27 = vmul.f32 %v299_v23, %v280_v18 }
  0xee   : > { %v305_v28 = vadd.f32 %v301_v24, %v292_v19  ;;  %v306_v29 = vadd.f32 %v302_v25, %v293_v20  ;;  %v307_v30 = vadd.f32 %v303_v26, %v294_v21  ;;  %v308_v31 = vadd.f32 %v304_v27, %v295_v22 }
  0xf0   : > { %v320_v32 = vmax.f32 %v305_v28, %v306_v29  ;;  %v321_v33 = vmax.f32 %v307_v30, %v308_v31 }
  0xf2   : > { %v322_v34 = vmax.f32 %v320_v32, %v321_v33 }
  0xf4   : > { %323 = vmax.xlane.f32.xlu1 %v322_v34 }
 0x181   : > { %v324_v46 = vpop.xlane.xlu1 %323 }
 0x182   : > { %vm325_vm3 = vcmp.eq.f32.partialorder %v305_v28, %v324_v46  ;;  %vm326_vm4 = vcmp.eq.f32.partialorder %v306_v29, %v324_v46  ;;  %vm327_vm5 = vcmp.eq.f32.partialorder %v307_v30, %v324_v46  ;;  %vm328_vm6 = vcmp.eq.f32.partialorder %v308_v31, %v324_v46 }
 0x183   : > { %v329_v47 = vsel %vm325_vm3, %v316_v41, 2147483647  ;;  %v330_v48 = vsel %vm326_vm4, %v317_v42, 2147483647  ;;  %v331_v49 = vsel %vm327_vm5, %v318_v43, 2147483647  ;;  %vm354_vm7 = vcmp.gt.f32.partialorder %v324_v46, %v353_v45 }
 0x184   : > { %v332_v50 = vsel %vm328_vm6, %v319_v44, 2147483647  ;;  %vm333_vm8 = vcmp.lt.s32.totalorder %v329_v47, %v330_v48  ;;  %v360_v51 = vsel %vm354_vm7, %v324_v46, %v353_v45 }
 0x185   : > { %v334_v52 = vsel %vm333_vm8, %v329_v47, %v330_v48  ;;  %vm335_vm9 = vcmp.lt.s32.totalorder %v331_v49, %v332_v50  ;;  %361 = vst.msk [vmem:[#allocation2] sm:$0xff] %vm357_vm2, %v360_v51 }
 0x186   : > { %v336_v53 = vsel %vm335_vm9, %v331_v49, %v332_v50 }
 0x187   : > { %vm337_vm10 = vcmp.lt.s32.totalorder %v334_v52, %v336_v53 }
 0x188   : > { %v338_v54 = vsel %vm337_vm10, %v334_v52, %v336_v53 }
 0x189   : > { %v340_v55 = vshra.s32 %v338_v54, 16  ;;  %v339_v57 = vand.u32 65535, %v338_v54 }
 0x18b   : > { %v342_v56 = vcvt.s32.f32 %v340_v55  ;;  %v341_v59 = vcvt.s32.f32 %v339_v57 }
 0x18d   : > { %343 = vmin.xlane.f32.xlu1 %v342_v56 }
 0x21a   : > { %v344_v58 = vpop.xlane.xlu1 %343 }
 0x21b   : > { %vm345_vm11 = vcmp.eq.f32.partialorder %v342_v56, %v344_v58  ;;  %v350_v61 = vcvt.f32.s32 %v344_v58 }
 0x21c   : > { %v346_v60 = vsel %vm345_vm11, %v341_v59, inf }
 0x21d   : > { %347 = vmin.xlane.f32.xlu0 %v346_v60  ;;  %v351_v63 = vshll.u32 %v350_v61, 16 }
 0x2aa   : > { %v348_v62 = vpop.xlane.xlu0 %347  ;;  %365 = sbr.rel (%p497_p9) target bundleno = 697 (0x2b9), region = 48 }
 0x2ab   : > { %v349_v0 = vcvt.f32.s32 %v348_v62 }
 0x2ad   : > { %v352_v2 = vadd.s32 %v351_v63, %v349_v0 }
 0x2af   : > { %v356_v3 = vsel %vm354_vm7, %v352_v2, %v355_v1 }
 0x2b0   : > { %358 = vst.msk [vmem:[#allocation3] sm:$0xff] %vm357_vm2, %v356_v3 }
 0x2b7   : > { %v366_v4 = vld [vmem:[#allocation3] sm:$0xff] }
 0x2b8   : > { %367 = vst.msk [vmem:[%s896_s3] sm:$0xff] %vm357_vm2, %v366_v4 }
 0x2b9 PF: > { %s19_s17 = sadd.s32 1, %s684_s17   ;;  %s906_s12 = smov %s668_s13 }
 0x2ba   : > { %p16_p6 = scmp.ge.s32.totalorder %s19_s17, 6   ;;  %s907_s13 = smov %s672_s14 }
 0x2bb   : > { %s908_s14 = smov %s761_s24  ;;  %s909_s15 = smov %s680_s16 }
 0x2bc   : > { %s910_s16 = smov %s912_s19  ;;  %18 = sbr.rel (!%p16_p6) target bundleno = 6 (0x6), region = 96 }
 0x2c3   :  { %387 = vsyncpa [#allocation5], 1 }
 0x2c4   :  { %389 = vsyncpa [#allocation5 + $0x1], 1 }
 0x2c5   :  { %390 = vsyncpa [#allocation7], 1 }
 0x2c6   :  { %392 = vsyncpa [#allocation7 + $0x1], 1 }

</bundles_post_ra>
